<compile_context>
chip_gen: v5e
topology: v5e:2x2
jax: 0.10.0
libtpu: 0.0.40
codegen_flags: <defaults>
</compile_context>

<pallas_src>
import functools

import jax
import jax.numpy as jnp
from jax.experimental import pallas as pl
from jax.experimental.pallas import tpu as pltpu


# ---------------------------------------------------------------------------
# Plain-JAX glue: pytorch3d.renderer.cameras.look_at_rotation equivalent
# ---------------------------------------------------------------------------
def _normalize(v, eps=1e-5):
    n = jnp.linalg.norm(v, axis=-1, keepdims=True)
    return v / jnp.maximum(n, eps)


def look_at_rotation(camera_position,
                     at=jnp.zeros((1, 3), jnp.float32),
                     up=jnp.array([[0.0, 1.0, 0.0]], jnp.float32)):
    """JAX port of pytorch3d.renderer.cameras.look_at_rotation."""
    z_axis = _normalize(at - camera_position)
    x_axis = _normalize(jnp.cross(up, z_axis))
    y_axis = _normalize(jnp.cross(z_axis, x_axis))
    is_close = jnp.all(jnp.isclose(x_axis, 0.0, atol=5e-3), axis=1, keepdims=True)
    replacement = _normalize(jnp.cross(y_axis, z_axis))
    x_axis = jnp.where(is_close, replacement, x_axis)
    R = jnp.concatenate(
        [x_axis[:, None, :], y_axis[:, None, :], z_axis[:, None, :]], axis=1)
    return jnp.transpose(R, (0, 2, 1))  # (1, 3, 3)


# ---------------------------------------------------------------------------
# Pallas kernel: streaming sum of (a - b)^2 reduced over rows to (8, K)
# partials, one partial block per "split" (per TensorCore on v7x).
# ---------------------------------------------------------------------------
def _sq_diff_partial_kernel(a_ref, b_ref, out_ref, *, n_chunks, n_parallel):
    t = pl.program_id(1)

    @pl.when(t == 0)
    def _init():
        out_ref[...] = jnp.zeros_like(out_ref)

    # Reduce the (tile_rows, K) tile to an (8, K) partial with static
    # sublane-group slice adds.  A few independent partial accumulators break
    # the serial add chain so the VALU pipeline stays full.
    parts = []
    for j in range(n_chunks):
        av = a_ref[j * 8:(j + 1) * 8, :]
        bv = b_ref[j * 8:(j + 1) * 8, :]
        if av.dtype != jnp.float32:   # static: only emitted for narrow inputs
            av = av.astype(jnp.float32)
            bv = bv.astype(jnp.float32)
        d = av - bv
        sq = d * d
        if j < n_parallel:
            parts.append(sq)
        else:
            parts[j % n_parallel] = parts[j % n_parallel] + sq

    partial = parts[0]
    for p in parts[1:]:
        partial = partial + p

    out_ref[0] = out_ref[0] + partial


def pallas_sq_diff_partials(a, b, *, num_splits=2, max_tile_bytes=4 << 20,
                            max_tile_rows=1024):
    """Per-split (8, K) partial sums of (a - b)^2 for (M, K) slabs a, b."""
    assert a.shape == b.shape and a.ndim == 2 and a.dtype == b.dtype
    M, K = a.shape
    itemsize = jnp.dtype(a.dtype).itemsize
    bytes_per_row = max(K * itemsize, 1)

    def _round_up8(x):
        return (x + 7) // 8 * 8

    # Biggest row tile that (a) keeps each input tile <= ~4 MiB (close to the
    # measured HBM-roofline sweet spot), (b) keeps the static unroll bounded,
    # (c) does not overshoot the per-split work.
    budget_rows = max(8, (max_tile_bytes // bytes_per_row) // 8 * 8)
    tile_rows = min(budget_rows, max_tile_rows,
                    _round_up8(pl.cdiv(M, num_splits)))
    tile_rows = max(8, tile_rows)

    total_tiles = pl.cdiv(M, tile_rows)
    tiles_per_split = pl.cdiv(total_tiles, num_splits)
    padded_m = num_splits * tiles_per_split * tile_rows
    if padded_m != M:
        # Zero padding: contributes exactly 0 to the sum, no in-kernel masking.
        a = jnp.pad(a, ((0, padded_m - M), (0, 0)))
        b = jnp.pad(b, ((0, padded_m - M), (0, 0)))

    n_chunks = tile_rows // 8
    n_parallel = max(1, min(8, n_chunks, 4096 // max(K, 1)))
    kernel = functools.partial(_sq_diff_partial_kernel,
                               n_chunks=n_chunks, n_parallel=n_parallel)

    return pl.pallas_call(
        kernel,
        out_shape=jax.ShapeDtypeStruct((num_splits, 8, K), jnp.float32),
        grid_spec=pltpu.PrefetchScalarGridSpec(
            num_scalar_prefetch=0,
            grid=(num_splits, tiles_per_split),
            in_specs=[
                pl.BlockSpec((tile_rows, K),
                             lambda c, t: (c * tiles_per_split + t, 0)),
                pl.BlockSpec((tile_rows, K),
                             lambda c, t: (c * tiles_per_split + t, 0)),
            ],
            out_specs=pl.BlockSpec((1, 8, K), lambda c, t: (c, 0, 0)),
        ),
        compiler_params=pltpu.CompilerParams(
            # Split axis shards across v7x's two TensorCores; the reduction
            # axis stays sequential so the resident output block accumulates.
            dimension_semantics=("parallel", "arbitrary"),
            vmem_limit_bytes=32 << 20),
    )(a, b)


def pallas_rgb_sq_diff_loss(image, image_ref, *, keep_channels=3,
                            num_splits=2, stream_dtype=None):
    """loss = sum((image[..., :keep] - image_ref[..., :keep])^2) via Pallas."""
    N, H, W, C = image.shape
    K = W * C
    a = image.reshape(N * H, K)
    b = image_ref.reshape(N * H, K)
    if stream_dtype is not None and stream_dtype != a.dtype:
        # Optional: halve HBM traffic (e.g. bf16); kernel accumulates in f32.
        a = a.astype(stream_dtype)
        b = b.astype(stream_dtype)
    partials = pallas_sq_diff_partials(a, b, num_splits=num_splits)
    # Tiny finalize in XLA: drop alpha lanes and reduce (num_splits, 8, W, C).
    partials = partials.reshape(num_splits, 8, W, C)
    return jnp.sum(partials[..., :keep_channels])


# ---------------------------------------------------------------------------
# Model.forward equivalent
# ---------------------------------------------------------------------------
def model_forward(camera_position, rendered_image, image_ref, use_pallas=None):
    # R = look_at_rotation(camera_position[None, :])
    R = look_at_rotation(camera_position[None, :])
    # T = -bmm(R^T, camera_position[None, :, None])[:, :, 0]
    T = -jnp.matmul(jnp.transpose(R, (0, 2, 1)),
                    camera_position[None, :, None])[:, :, 0]

    # TODO(synk): pytorch3d MeshRasterizer + HardFlatShader (the self.renderer
    # call) has no clean Pallas equivalent; `rendered_image` stands in for
    # renderer(meshes_world=meshes, R=R, T=T).
    image = rendered_image

    if use_pallas is None:
        # Below ~2 MiB a fused XLA reduction beats the pallas_call launch cost.
        use_pallas = image.size * image.dtype.itemsize >= (2 << 20)
    if use_pallas:
        loss = pallas_rgb_sq_diff_loss(image, image_ref)
    else:
        loss = jnp.sum((image[..., :3] - image_ref[..., :3]) ** 2)
    return loss, image, R, T


if __name__ == "__main__":
    key = jax.random.PRNGKey(0)
    k_img, k_ref = jax.random.split(key)

    # Small, deterministic shapes: one RGBA render of 64x64.
    N, H, W = 1, 64, 64
    camera_position = jnp.array([3.0, 0.0, 2.5], dtype=jnp.float32)  # nn.Parameter
    rendered_image = jax.random.uniform(k_img, (N, H, W, 4), dtype=jnp.float32)
    image_ref = jax.random.uniform(k_ref, (N, H, W, 4), dtype=jnp.float32)

    fwd = jax.jit(model_forward, static_argnames=("use_pallas",))
    loss, image, R, T = fwd(camera_position, rendered_image, image_ref,
                            use_pallas=True)   # force the Pallas path
    jax.block_until_ready((loss, image, R, T))

    # Correctness check of the Pallas reduction vs pure JAX.
    ref_loss = jnp.sum((rendered_image[..., :3] - image_ref[..., :3]) ** 2)
    assert jnp.allclose(loss, ref_loss, rtol=1e-5, atol=1e-5), (loss, ref_loss)
    assert R.shape == (1, 3, 3) and T.shape == (1, 3)

    print("KERNEL_OK")
</pallas_src>

<mosaic_0001>
module attributes {stable_mosaic.version = 11 : i64} {
  func.func @_sq_diff_partial_kernel(%arg0: i32, %arg1: i32, %arg2: memref<32x256xf32, #tpu.memory_space<vmem>>, %arg3: memref<32x256xf32, #tpu.memory_space<vmem>>, %arg4: memref<1x8x256xf32, #tpu.memory_space<vmem>>) attributes {dimension_semantics = [#tpu.dimension_semantics<parallel>, #tpu.dimension_semantics<arbitrary>], iteration_bounds = array<i64: 2, 1>, scalar_prefetch = 0 : i64, scratch_operands = 0 : i64, tpu.core_type = #tpu.core_type<tc>, window_params = [{transform_indices = @transform_0, window_bounds = array<i64: 32, 256>}, {transform_indices = @transform_1, window_bounds = array<i64: 32, 256>}, {transform_indices = @transform_2, window_bounds = array<i64: 1, 8, 256>}]} {
    %c0_i32 = arith.constant 0 : i32
    %0 = arith.cmpi eq, %arg1, %c0_i32 : i32
    %1 = arith.extui %0 : i1 to i32
    %c0_i32_0 = arith.constant 0 : i32
    %2 = arith.cmpi ne, %1, %c0_i32_0 : i32
    scf.if %2 {
      %cst = arith.constant 0.000000e+00 : f32
      %28 = vector.broadcast %cst : f32 to vector<1x8x256xf32>
      %c0_19 = arith.constant 0 : index
      %c0_20 = arith.constant 0 : index
      %c0_21 = arith.constant 0 : index
      %29 = vector.load %arg4[%c0_19, %c0_20, %c0_21] : memref<1x8x256xf32, #tpu.memory_space<vmem>>, vector<1x8x256xf32>
      tpu.vector_store %arg4[%c0_19, %c0_20, %c0_21], %28 {strides = array<i32>} : memref<1x8x256xf32, #tpu.memory_space<vmem>>, vector<1x8x256xf32>,
    } else {
    }
    %c0 = arith.constant 0 : index
    %c0_1 = arith.constant 0 : index
    %3 = vector.load %arg2[%c0, %c0_1] : memref<32x256xf32, #tpu.memory_space<vmem>>, vector<8x256xf32>
    %c0_2 = arith.constant 0 : index
    %c0_3 = arith.constant 0 : index
    %4 = vector.load %arg3[%c0_2, %c0_3] : memref<32x256xf32, #tpu.memory_space<vmem>>, vector<8x256xf32>
    %5 = arith.subf %3, %4 : vector<8x256xf32>
    %6 = arith.mulf %5, %5 : vector<8x256xf32>
    %c8 = arith.constant 8 : index
    %c0_4 = arith.constant 0 : index
    %7 = vector.load %arg2[%c8, %c0_4] : memref<32x256xf32, #tpu.memory_space<vmem>>, vector<8x256xf32>
    %c8_5 = arith.constant 8 : index
    %c0_6 = arith.constant 0 : index
    %8 = vector.load %arg3[%c8_5, %c0_6] : memref<32x256xf32, #tpu.memory_space<vmem>>, vector<8x256xf32>
    %9 = arith.subf %7, %8 : vector<8x256xf32>
    %10 = arith.mulf %9, %9 : vector<8x256xf32>
    %c16 = arith.constant 16 : index
    %c0_7 = arith.constant 0 : index
    %11 = vector.load %arg2[%c16, %c0_7] : memref<32x256xf32, #tpu.memory_space<vmem>>, vector<8x256xf32>
    %c16_8 = arith.constant 16 : index
    %c0_9 = arith.constant 0 : index
    %12 = vector.load %arg3[%c16_8, %c0_9] : memref<32x256xf32, #tpu.memory_space<vmem>>, vector<8x256xf32>
    %13 = arith.subf %11, %12 : vector<8x256xf32>
    %14 = arith.mulf %13, %13 : vector<8x256xf32>
    %c24 = arith.constant 24 : index
    %c0_10 = arith.constant 0 : index
    %15 = vector.load %arg2[%c24, %c0_10] : memref<32x256xf32, #tpu.memory_space<vmem>>, vector<8x256xf32>
    %c24_11 = arith.constant 24 : index
    %c0_12 = arith.constant 0 : index
    %16 = vector.load %arg3[%c24_11, %c0_12] : memref<32x256xf32, #tpu.memory_space<vmem>>, vector<8x256xf32>
    %17 = arith.subf %15, %16 : vector<8x256xf32>
    %18 = arith.mulf %17, %17 : vector<8x256xf32>
    %19 = arith.addf %6, %10 : vector<8x256xf32>
    %20 = arith.addf %19, %14 : vector<8x256xf32>
    %21 = arith.addf %20, %18 : vector<8x256xf32>
    %c0_13 = arith.constant 0 : index
    %c0_14 = arith.constant 0 : index
    %c0_15 = arith.constant 0 : index
    %22 = vector.load %arg4[%c0_13, %c0_14, %c0_15] : memref<1x8x256xf32, #tpu.memory_space<vmem>>, vector<1x8x256xf32>
    %23 = vector.shape_cast %22 : vector<1x8x256xf32> to vector<8x256xf32>
    %24 = arith.addf %23, %21 : vector<8x256xf32>
    %c0_16 = arith.constant 0 : index
    %c0_17 = arith.constant 0 : index
    %c0_18 = arith.constant 0 : index
    %25 = vector.load %arg4[%c0_16, %c0_17, %c0_18] : memref<1x8x256xf32, #tpu.memory_space<vmem>>, vector<1x8x256xf32>
    %26 = vector.shape_cast %25 : vector<1x8x256xf32> to vector<8x256xf32>
    %27 = vector.shape_cast %24 : vector<8x256xf32> to vector<1x8x256xf32>
    tpu.vector_store %arg4[%c0_16, %c0_17, %c0_18], %27 {strides = array<i32>} : memref<1x8x256xf32, #tpu.memory_space<vmem>>, vector<1x8x256xf32>,
    return
  }
  func.func @transform_0(%arg0: i32, %arg1: i32) -> (i32, i32) {
    %c1_i32 = arith.constant 1 : i32
    %0 = arith.muli %arg0, %c1_i32 : i32
    %1 = arith.addi %0, %arg1 : i32
    %c0_i32 = arith.constant 0 : i32
    %c0_i32_0 = arith.constant 0 : i32
    return %1, %c0_i32 : i32, i32
  }
  func.func @transform_1(%arg0: i32, %arg1: i32) -> (i32, i32) {
    %c1_i32 = arith.constant 1 : i32
    %0 = arith.muli %arg0, %c1_i32 : i32
    %1 = arith.addi %0, %arg1 : i32
    %c0_i32 = arith.constant 0 : i32
    %c0_i32_0 = arith.constant 0 : i32
    return %1, %c0_i32 : i32, i32
  }
  func.func @transform_2(%arg0: i32, %arg1: i32) -> (i32, i32, i32) {
    %c0_i32 = arith.constant 0 : i32
    %c0_i32_0 = arith.constant 0 : i32
    %c0_i32_1 = arith.constant 0 : i32
    return %arg0, %c0_i32, %c0_i32_0 : i32, i32, i32
  }
}

</mosaic_0001>

<bundles_post_ra>
// kernel: model_forward.1
= control target key start
LH: loop header
LB: loop body
LE: loop exit
PB: predicated region body
PF: predicated region fallthrough
CT: control target
= control target key end

     0   :  { %s407_s9 = smov 0   ;;  %s409_s10 = smov 0   ;;  %s450_s0 = inlined_call_operand.vmem [shape: f32[64,256], index: 0, kind: input, shape index: {}]   ;;  %s451_s1 = inlined_call_operand.vmem [shape: f32[64,256], index: 1, kind: input, shape index: {}]   ;;  %s452_s2 = inlined_call_operand.vmem [shape: f32[2,8,256], index: 2, kind: output, shape index: {}]  }
   0x1   :  { %s411_s11 = smov 0  }
   0x2 LB: > { %s24_s12 = sadd.s32 1, %s386_s10  ;;  %p329_p0 = scmp.ge.s32.totalorder %s390_s11, 1  ;;  %s390_s11 = sphi %s411_s11, %s12_s11   ;;  %s386_s10 = sphi %s409_s10, %s454_s10   ;;  %s382_s9 = sphi %s407_s9, %s453_s9  }
   0x3   : > { %p26_p1 = scmp.ge.s32.totalorder %s24_s12, 2  ;;  %p146_p2 = scmp.lt.s32.totalorder %s390_s11, 3 }
   0x5   : > { %s456_s12 = smov (%p26_p1, %s24_s12), 0  ;;  %p147_p3 = pnand %p329_p0, %p146_p2 }
   0x6   : > { %s330_s13 = sshll.u32 (!%p147_p3), %s382_s9, 2  ;;  %p195_p5 = scmp.lt.s32.totalorder (!%p147_p3), %s382_s9, 1 }
   0x7   : > { %150 = sbr.rel (%p147_p3) target bundleno = 31 (0x1f), region = 28  ;;  %p179_p4 = scmp.lt.s32.totalorder (!%p147_p3), %s330_s13, 7 }
   0xc   : > { %s458_s13 = smov (!%p179_p4, %s330_s13), 7  ;;  %s460_s9 = smov (!%p195_p5, %s382_s9), 1 }
   0xd   : > { %s340_s14 = sshll.u32 %s458_s13, 4  ;;  %s342_s21 = sshll.u32 %s460_s9, 4 }
   0xe   : > { %s183_s17 = scalar_lea.vmem %s450_s0, %s340_s14  ;;  %s192_s20 = scalar_lea.vmem %s451_s1, %s340_s14 }
   0xf   : > { %v206_v0 = vld [vmem:[%s183_s17] sm:$0xff]  ;;  %v214_v2 = vld [vmem:[%s183_s17 + $0x10] sm:$0xff]  ;;  %v207_v11 = vld [vmem:[%s183_s17 + $0x8] sm:$0xff]  ;;  %s199_s24 = scalar_lea.vmem %s452_s2, %s342_s21 }
  0x10   : > { %v208_v1 = vld [vmem:[%s192_s20] sm:$0xff]  ;;  %v216_v4 = vld [vmem:[%s192_s20 + $0x10] sm:$0xff]  ;;  %v209_v14 = vld [vmem:[%s192_s20 + $0x8] sm:$0xff] }
  0x11   : > { %v210_v3 = vsub.f32 %v206_v0, %v208_v1  ;;  %v222_v5 = vld [vmem:[%s183_s17 + $0x20] sm:$0xff]  ;;  %v218_v7 = vsub.f32 %v214_v2, %v216_v4  ;;  %v230_v9 = vld [vmem:[%s183_s17 + $0x30] sm:$0xff]  ;;  %v215_v15 = vld [vmem:[%s183_s17 + $0x18] sm:$0xff]  ;;  %v211_v19 = vsub.f32 %v207_v11, %v209_v14 }
  0x12   : > { %v224_v6 = vld [vmem:[%s192_s20 + $0x20] sm:$0xff]  ;;  %v232_v10 = vld [vmem:[%s192_s20 + $0x30] sm:$0xff]  ;;  %v217_v16 = vld [vmem:[%s192_s20 + $0x18] sm:$0xff] }
  0x13   : > { %v226_v8 = vsub.f32 %v222_v5, %v224_v6  ;;  %v212_v12 = vmul.f32 %v210_v3, %v210_v3  ;;  %v234_v13 = vsub.f32 %v230_v9, %v232_v10  ;;  %v220_v17 = vmul.f32 %v218_v7, %v218_v7  ;;  %v223_v21 = vld [vmem:[%s183_s17 + $0x28] sm:$0xff]  ;;  %v231_v23 = vld [vmem:[%s183_s17 + $0x38] sm:$0xff] }
  0x14   : > { %v219_v20 = vsub.f32 %v215_v15, %v217_v16  ;;  %v225_v22 = vld [vmem:[%s192_s20 + $0x28] sm:$0xff]  ;;  %v233_v26 = vld [vmem:[%s192_s20 + $0x38] sm:$0xff]  ;;  %v213_v28 = vmul.f32 %v211_v19, %v211_v19 }
  0x15   : > { %v228_v18 = vmul.f32 %v226_v8, %v226_v8  ;;  %v236_v24 = vmul.f32 %v234_v13, %v234_v13  ;;  %v227_v25 = vsub.f32 %v223_v21, %v225_v22  ;;  %v238_v27 = vadd.f32 %v220_v17, %v212_v12 }
  0x16   : > { %v221_v29 = vmul.f32 %v219_v20, %v219_v20  ;;  %v235_v30 = vsub.f32 %v231_v23, %v233_v26 }
  0x17   : > { %v229_v31 = vmul.f32 %v227_v25, %v227_v25  ;;  %v240_v32 = vadd.f32 %v238_v27, %v228_v18 }
  0x18   : > { %v237_v33 = vmul.f32 %v235_v30, %v235_v30  ;;  %v239_v34 = vadd.f32 %v221_v29, %v213_v28 }
  0x19   : > { %v242_v35 = vadd.f32 %v240_v32, %v236_v24 }
  0x1a   : > { %v241_v36 = vadd.f32 %v239_v34, %v229_v31 }
  0x1b   : > { %248 = vst [vmem:[%s199_s24] sm:$0xff] %v242_v35 }
  0x1c   : > { %v243_v37 = vadd.f32 %v241_v36, %v237_v33 }
  0x1e   : > { %249 = vst [vmem:[%s199_s24 + $0x8] sm:$0xff] %v243_v37 }
  0x1f PF: > { %s12_s11 = sadd.s32 1, %s390_s11   ;;  %s453_s9 = smov %s386_s10 }
  0x20   : > { %p9_p6 = scmp.ge.s32.totalorder %s12_s11, 4   ;;  %s454_s10 = smov %s456_s12 }
  0x22   :  { %11 = sbr.rel (!%p9_p6) target bundleno = 2 (0x2), region = 65 }

</bundles_post_ra>
